<compile_context>
chip_gen: v7x
topology: tpu7x:2x2x1
jax: 0.10.0
libtpu: 0.0.40
codegen_flags: <defaults>
</compile_context>

<pallas_src>
import functools

import jax
import jax.numpy as jnp
from jax.experimental import pallas as pl
from jax.experimental.pallas import tpu as pltpu


def _srrnn_kernel(xw_ref, sw_ref, st_ref, s2_ref, probs_ref, alpha_scratch,
                  *, block_t):
    """One grid step == one (batch-chunk, time-block) tile.

    xw_ref:    (TT, Bc, H) bf16  x_t @ W_ih^T + b_ih + b_hh (+ h0 @ W_hh^T at t==0)
    sw_ref:    (K, H)      bf16  S @ W_hh^T
    st_ref:    (H, K)      bf16  (2 / tau) * S^T
    s2_ref:    (1, K)      f32   -||s_i||^2 / tau
    probs_ref: (TT, Bc, K) f32   transition probabilities (only kernel output)
    alpha_scratch: (Bc, K) f32   alpha carry across time blocks (VMEM)
    """
    tb = pl.program_id(1)

    @pl.when(tb == 0)
    def _():
        # alpha_{-1} == 0; the h0 @ W_hh^T contribution is folded into xw[0].
        alpha_scratch[...] = jnp.zeros_like(alpha_scratch)

    sw = sw_ref[...]          # (K, H)
    st = st_ref[...]          # (H, K)
    s2 = s2_ref[...]          # (1, K)

    def step(t, alpha_prev):
        # pre_t = xW_t + (alpha_{t-1} @ S) @ W_hh^T = xW_t + alpha_{t-1} @ SW
        pre = xw_ref[t].astype(jnp.float32) + jnp.dot(
            alpha_prev.astype(jnp.bfloat16), sw,
            preferred_element_type=jnp.float32)                          # (Bc, H)
        h_prime = jnp.maximum(pre, 0.0)

        # logits_i = (2 h'.s_i - ||s_i||^2)/tau ; ||h'||^2 cancels in softmax.
        logits = jnp.dot(h_prime.astype(jnp.bfloat16), st,
                         preferred_element_type=jnp.float32) + s2        # (Bc, K)
        logits = logits - jnp.max(logits, axis=-1, keepdims=True)
        e = jnp.exp(logits)
        alpha = e * pl.reciprocal(jnp.sum(e, axis=-1, keepdims=True),
                                  approx=True)                           # (Bc, K)

        probs_ref[t] = alpha
        return alpha

    alpha_last = jax.lax.fori_loop(0, block_t, step, alpha_scratch[...],
                                   unroll=min(8, block_t))
    alpha_scratch[...] = alpha_last


def _pick_block_t(T, B_chunk, H, K, budget_bytes):
    """Largest time block whose double-buffered streamed blocks fit the budget."""
    # Per-timestep VMEM cost: xw (bf16) + probs (f32), x2 pipeline buffers each.
    per_t = 2 * (B_chunk * H * 2) + 2 * (B_chunk * K * 4)
    resident = 2 * (K * H * 2 + H * K * 2 + K * 4) + B_chunk * K * 4
    avail = max(budget_bytes - resident, per_t)
    bt = int(max(1, min(T, avail // per_t, 512)))
    # Prefer a block that divides T so the padded tail does not waste a whole
    # serial block of compute (bounded search so we never degrade badly).
    for cand in range(bt, max(bt - 32, 0), -1):
        if T % cand == 0:
            return cand
    return bt


@functools.partial(jax.jit, static_argnames=("temperature", "batch_chunks"))
def srrnn_forward(x, h0, w_ih, w_hh, b_ih, b_hh, states, temperature=1.0,
                  batch_chunks=1):
    """x: (B, T, I), h0: (B, H). Returns (output (B,T,H), h_n (B,H), probs (B,T,K)).

    batch_chunks: set to 2 on v7x (two TensorCores per chip) to shard the batch
    across cores via a 'parallel' grid axis; keep 1 on v5e/v6e (single TC).
    """
    B, T, I = x.shape
    H = w_hh.shape[0]
    K = states.shape[0]

    f32 = jnp.float32
    bf16 = jnp.bfloat16

    # Batch padding: bf16 activations -> pad batch chunks to a multiple of 16.
    n_bchunks = max(1, int(batch_chunks))
    B_pad0 = ((B + 15) // 16) * 16
    B_chunk = ((pl.cdiv(B_pad0, n_bchunks) + 15) // 16) * 16
    B_pad = B_chunk * n_bchunks

    # VMEM-budget-aware time block (fits v7x's 64 MiB physical VMEM with room).
    VMEM_BUDGET = 36 * 1024 * 1024
    block_t = _pick_block_t(T, B_chunk, H, K, VMEM_BUDGET)
    n_tblocks = pl.cdiv(T, block_t)
    T_pad = n_tblocks * block_t

    inv_tau = 1.0 / float(temperature)

    xf = x.astype(f32)
    bias = (b_ih.astype(f32) + b_hh.astype(f32)).reshape(1, 1, H)

    # Hoisted input projection, produced directly time-major: (T, B, H).
    xw = jnp.einsum("bti,hi->tbh", xf, w_ih.astype(f32),
                    preferred_element_type=f32) + bias
    # Fold h0 @ W_hh^T into the first timestep (alpha_{-1} == 0 in the kernel).
    h0_contrib = jnp.dot(h0.astype(f32), jnp.transpose(w_hh.astype(f32)),
                         preferred_element_type=f32)                  # (B, H)
    xw = xw.at[0].add(h0_contrib)
    xw = jnp.pad(xw, ((0, T_pad - T), (0, B_pad - B), (0, 0))).astype(bf16)

    states_f = states.astype(f32)                                     # (K, H)
    sw = jnp.dot(states_f, jnp.transpose(w_hh.astype(f32)),
                 preferred_element_type=f32).astype(bf16)             # (K, H)
    st_scaled = ((2.0 * inv_tau) * jnp.transpose(states_f)).astype(bf16)   # (H, K)
    s2_scaled = (-inv_tau * jnp.sum(states_f * states_f, axis=1)).reshape(1, K)

    # Raise the scoped VMEM limit only when the conservative default would not
    # fit (avoids over-requesting on small parts / older chips).
    need = (2 * block_t * B_chunk * (H * 2 + K * 4)
            + 2 * (K * H * 2 + H * K * 2 + K * 4) + B_chunk * K * 4)
    vmem_limit = None
    if need > 16 * 1024 * 1024:
        vmem_limit = int(min(need + need // 2, 56 * 1024 * 1024))

    kernel = functools.partial(_srrnn_kernel, block_t=block_t)

    probs_tm = pl.pallas_call(
        kernel,
        out_shape=jax.ShapeDtypeStruct((T_pad, B_pad, K), f32),
        grid_spec=pltpu.PrefetchScalarGridSpec(
            num_scalar_prefetch=0,
            grid=(n_bchunks, n_tblocks),
            in_specs=[
                pl.BlockSpec((block_t, B_chunk, H), lambda bc, tb: (tb, bc, 0)),  # xw
                pl.BlockSpec((K, H), lambda bc, tb: (0, 0)),                      # S @ W_hh^T
                pl.BlockSpec((H, K), lambda bc, tb: (0, 0)),                      # (2/tau) S^T
                pl.BlockSpec((1, K), lambda bc, tb: (0, 0)),                      # -||s||^2/tau
            ],
            out_specs=pl.BlockSpec((block_t, B_chunk, K),
                                   lambda bc, tb: (tb, bc, 0)),
            scratch_shapes=[pltpu.VMEM((B_chunk, K), f32)],
        ),
        compiler_params=pltpu.CompilerParams(
            # batch chunks are independent; time is a serial recurrence.
            dimension_semantics=("parallel", "arbitrary"),
            vmem_limit_bytes=vmem_limit,
        ),
    )(xw, sw, st_scaled, s2_scaled)

    probs = jnp.transpose(probs_tm[:T, :B, :], (1, 0, 2))            # (B, T, K)
    # h_t = alpha_t @ S reconstructed with one big batch-major matmul (no
    # (T,B,H) HBM writeback from the kernel, no output transpose).
    output = jnp.einsum("btk,kh->bth", probs, states_f,
                        preferred_element_type=f32)                   # (B, T, H)
    h_n = output[:, -1, :]                                            # (B, H)
    return output, h_n, probs


def _srrnn_reference(x, h0, w_ih, w_hh, b_ih, b_hh, states, temperature=1.0):
    """Pure-JAX reference matching the PyTorch forward (for correctness check)."""
    def step(h, x_t):
        pre = x_t @ w_ih.T + b_ih + h @ w_hh.T + b_hh
        h_prime = jnp.maximum(pre, 0.0)
        d2 = jnp.sum((h_prime[:, None, :] - states[None, :, :]) ** 2, axis=-1)
        alpha = jax.nn.softmax(-d2 / temperature, axis=-1)
        h_t = alpha @ states
        return h_t, (h_t, alpha)

    xs = jnp.swapaxes(x, 0, 1)                     # (T, B, I)
    h_n, (hs, alphas) = jax.lax.scan(step, h0, xs)
    return jnp.swapaxes(hs, 0, 1), h_n, jnp.swapaxes(alphas, 0, 1)


if __name__ == "__main__":
    # Small shapes consistent with the module's forward: (batch, seq_len, input_size)
    B, T, I, H, K = 2, 8, 16, 32, 8
    temperature = 1.0

    key = jax.random.PRNGKey(0)
    kx, kh, k1, k2, k3, k4, k5 = jax.random.split(key, 7)

    x = jax.random.normal(kx, (B, T, I), dtype=jnp.float32)
    h0 = jax.random.normal(kh, (B, H), dtype=jnp.float32)

    # Deterministic parameter init mirroring nn.RNNCell (U(-1/sqrt(H), 1/sqrt(H)))
    # and kaiming_normal-style states.
    bound = 1.0 / jnp.sqrt(jnp.float32(H))
    w_ih = jax.random.uniform(k1, (H, I), minval=-bound, maxval=bound, dtype=jnp.float32)
    w_hh = jax.random.uniform(k2, (H, H), minval=-bound, maxval=bound, dtype=jnp.float32)
    b_ih = jax.random.uniform(k3, (H,), minval=-bound, maxval=bound, dtype=jnp.float32)
    b_hh = jax.random.uniform(k4, (H,), minval=-bound, maxval=bound, dtype=jnp.float32)
    states = jax.random.normal(k5, (K, H), dtype=jnp.float32) * jnp.sqrt(2.0 / H)

    output, h_n, probs = srrnn_forward(x, h0, w_ih, w_hh, b_ih, b_hh, states,
                                       temperature=temperature)
    jax.block_until_ready((output, h_n, probs))

    assert output.shape == (B, T, H)
    assert h_n.shape == (B, H)
    assert probs.shape == (B, T, K)

    ref_out, ref_hn, ref_probs = _srrnn_reference(x, h0, w_ih, w_hh, b_ih, b_hh,
                                                  states, temperature=temperature)
    assert jnp.allclose(output, ref_out, atol=5e-2, rtol=5e-2)
    assert jnp.allclose(h_n, ref_hn, atol=5e-2, rtol=5e-2)
    assert jnp.allclose(probs, ref_probs, atol=5e-2, rtol=5e-2)

    print("KERNEL_OK")
</pallas_src>

<mosaic_0001>
module attributes {stable_mosaic.version = 11 : i64} {
  func.func @_srrnn_kernel(%arg0: i32, %arg1: i32, %arg2: memref<8x16x32xbf16, #tpu.memory_space<vmem>>, %arg3: memref<8x32xbf16, #tpu.memory_space<vmem>>, %arg4: memref<32x8xbf16, #tpu.memory_space<vmem>>, %arg5: memref<1x8xf32, #tpu.memory_space<vmem>>, %arg6: memref<8x16x8xf32, #tpu.memory_space<vmem>>, %arg7: memref<16x8xf32, #tpu.memory_space<vmem>>) attributes {dimension_semantics = [#tpu.dimension_semantics<parallel>, #tpu.dimension_semantics<arbitrary>], iteration_bounds = array<i64: 1, 1>, scalar_prefetch = 0 : i64, scratch_operands = 1 : i64, tpu.core_type = #tpu.core_type<tc>, window_params = [{transform_indices = @transform_0, window_bounds = array<i64: 8, 16, 32>}, {pipeline_mode = #tpu.pipeline_mode<synchronous>, transform_indices = @transform_1, window_bounds = array<i64: 8, 32>}, {pipeline_mode = #tpu.pipeline_mode<synchronous>, transform_indices = @transform_2, window_bounds = array<i64: 32, 8>}, {pipeline_mode = #tpu.pipeline_mode<synchronous>, transform_indices = @transform_3, window_bounds = array<i64: 1, 8>}, {transform_indices = @transform_4, window_bounds = array<i64: 8, 16, 8>}]} {
    %c0_i32 = arith.constant 0 : i32
    %0 = arith.cmpi eq, %arg1, %c0_i32 : i32
    %1 = arith.extui %0 : i1 to i32
    %c0_i32_0 = arith.constant 0 : i32
    %2 = arith.cmpi ne, %1, %c0_i32_0 : i32
    scf.if %2 {
      %cst_82 = arith.constant 0.000000e+00 : f32
      %224 = vector.broadcast %cst_82 : f32 to vector<16x8xf32>
      %c0_83 = arith.constant 0 : index
      %c0_84 = arith.constant 0 : index
      %225 = vector.load %arg7[%c0_83, %c0_84] : memref<16x8xf32, #tpu.memory_space<vmem>>, vector<16x8xf32>
      tpu.vector_store %arg7[%c0_83, %c0_84], %224 {strides = array<i32>} : memref<16x8xf32, #tpu.memory_space<vmem>>, vector<16x8xf32>,
    } else {
    }
    %c0 = arith.constant 0 : index
    %c0_1 = arith.constant 0 : index
    %3 = vector.load %arg3[%c0, %c0_1] : memref<8x32xbf16, #tpu.memory_space<vmem>>, vector<8x32xbf16>
    %c0_2 = arith.constant 0 : index
    %c0_3 = arith.constant 0 : index
    %4 = vector.load %arg4[%c0_2, %c0_3] : memref<32x8xbf16, #tpu.memory_space<vmem>>, vector<32x8xbf16>
    %c0_4 = arith.constant 0 : index
    %c0_5 = arith.constant 0 : index
    %5 = vector.load %arg5[%c0_4, %c0_5] : memref<1x8xf32, #tpu.memory_space<vmem>>, vector<1x8xf32>
    %c0_6 = arith.constant 0 : index
    %c0_7 = arith.constant 0 : index
    %6 = vector.load %arg7[%c0_6, %c0_7] : memref<16x8xf32, #tpu.memory_space<vmem>>, vector<16x8xf32>
    %c0_i32_8 = arith.constant 0 : i32
    %7 = arith.index_cast %c0_i32_8 : i32 to index
    %c0_9 = arith.constant 0 : index
    %c0_10 = arith.constant 0 : index
    %8 = vector.load %arg2[%7, %c0_9, %c0_10] : memref<8x16x32xbf16, #tpu.memory_space<vmem>>, vector<1x16x32xbf16>
    %9 = vector.shape_cast %8 : vector<1x16x32xbf16> to vector<16x32xbf16>
    %10 = arith.extf %9 : vector<16x32xbf16> to vector<16x32xf32>
    %11 = arith.truncf %6 : vector<16x8xf32> to vector<16x8xbf16>
    %cst = arith.constant dense<0.000000e+00> : vector<16x32xf32>
    %12 = tpu.matmul %11, %3, %cst {dimension_numbers = #tpu.dot_dimension_numbers<[1], [0], [0], [1], [0, 0, 1, 1], [], []>} : vector<16x8xbf16>, vector<8x32xbf16>, vector<16x32xf32> -> vector<16x32xf32>
    %13 = arith.addf %10, %12 : vector<16x32xf32>
    %cst_11 = arith.constant 0.000000e+00 : f32
    %14 = vector.broadcast %cst_11 : f32 to vector<16x32xf32>
    %15 = arith.maximumf %13, %14 : vector<16x32xf32>
    %16 = arith.truncf %15 : vector<16x32xf32> to vector<16x32xbf16>
    %cst_12 = arith.constant dense<0.000000e+00> : vector<16x8xf32>
    %17 = tpu.matmul %16, %4, %cst_12 {dimension_numbers = #tpu.dot_dimension_numbers<[1], [0], [0], [1], [0, 0, 1, 1], [], []>} : vector<16x32xbf16>, vector<32x8xbf16>, vector<16x8xf32> -> vector<16x8xf32>
    %18 = vector.broadcast %5 : vector<1x8xf32> to vector<16x8xf32>
    %19 = arith.addf %17, %18 : vector<16x8xf32>
    %cst_13 = arith.constant dense<0xFF800000> : vector<16xf32>
    %20 = vector.multi_reduction <maximumf>, %19, %cst_13 [1] : vector<16x8xf32> to vector<16xf32>
    %21 = vector.shape_cast %20 : vector<16xf32> to vector<16x1xf32>
    %22 = vector.broadcast %21 : vector<16x1xf32> to vector<16x8xf32>
    %23 = arith.subf %19, %22 : vector<16x8xf32>
    %24 = math.exp %23 : vector<16x8xf32>
    %cst_14 = arith.constant dense<0.000000e+00> : vector<16xf32>
    %25 = vector.multi_reduction <add>, %24, %cst_14 [1] : vector<16x8xf32> to vector<16xf32>
    %26 = vector.shape_cast %25 : vector<16xf32> to vector<16x1xf32>
    %27 = tpu.reciprocal %26 {approx = true} : vector<16x1xf32> -> vector<16x1xf32>
    %28 = vector.broadcast %27 : vector<16x1xf32> to vector<16x8xf32>
    %29 = arith.mulf %24, %28 : vector<16x8xf32>
    %30 = arith.index_cast %c0_i32_8 : i32 to index
    %c0_15 = arith.constant 0 : index
    %c0_16 = arith.constant 0 : index
    %31 = vector.load %arg6[%30, %c0_15, %c0_16] : memref<8x16x8xf32, #tpu.memory_space<vmem>>, vector<1x16x8xf32>
    %32 = vector.shape_cast %31 : vector<1x16x8xf32> to vector<16x8xf32>
    %33 = vector.shape_cast %29 : vector<16x8xf32> to vector<1x16x8xf32>
    tpu.vector_store %arg6[%30, %c0_15, %c0_16], %33 {strides = array<i32>} : memref<8x16x8xf32, #tpu.memory_space<vmem>>, vector<1x16x8xf32>,
    %c1_i32 = arith.constant 1 : i32
    %34 = arith.index_cast %c1_i32 : i32 to index
    %c0_17 = arith.constant 0 : index
    %c0_18 = arith.constant 0 : index
    %35 = vector.load %arg2[%34, %c0_17, %c0_18] : memref<8x16x32xbf16, #tpu.memory_space<vmem>>, vector<1x16x32xbf16>
    %36 = vector.shape_cast %35 : vector<1x16x32xbf16> to vector<16x32xbf16>
    %37 = arith.extf %36 : vector<16x32xbf16> to vector<16x32xf32>
    %38 = arith.truncf %29 : vector<16x8xf32> to vector<16x8xbf16>
    %cst_19 = arith.constant dense<0.000000e+00> : vector<16x32xf32>
    %39 = tpu.matmul %38, %3, %cst_19 {dimension_numbers = #tpu.dot_dimension_numbers<[1], [0], [0], [1], [0, 0, 1, 1], [], []>} : vector<16x8xbf16>, vector<8x32xbf16>, vector<16x32xf32> -> vector<16x32xf32>
    %40 = arith.addf %37, %39 : vector<16x32xf32>
    %cst_20 = arith.constant 0.000000e+00 : f32
    %41 = vector.broadcast %cst_20 : f32 to vector<16x32xf32>
    %42 = arith.maximumf %40, %41 : vector<16x32xf32>
    %43 = arith.truncf %42 : vector<16x32xf32> to vector<16x32xbf16>
    %cst_21 = arith.constant dense<0.000000e+00> : vector<16x8xf32>
    %44 = tpu.matmul %43, %4, %cst_21 {dimension_numbers = #tpu.dot_dimension_numbers<[1], [0], [0], [1], [0, 0, 1, 1], [], []>} : vector<16x32xbf16>, vector<32x8xbf16>, vector<16x8xf32> -> vector<16x8xf32>
    %45 = vector.broadcast %5 : vector<1x8xf32> to vector<16x8xf32>
    %46 = arith.addf %44, %45 : vector<16x8xf32>
    %cst_22 = arith.constant dense<0xFF800000> : vector<16xf32>
    %47 = vector.multi_reduction <maximumf>, %46, %cst_22 [1] : vector<16x8xf32> to vector<16xf32>
    %48 = vector.shape_cast %47 : vector<16xf32> to vector<16x1xf32>
    %49 = vector.broadcast %48 : vector<16x1xf32> to vector<16x8xf32>
    %50 = arith.subf %46, %49 : vector<16x8xf32>
    %51 = math.exp %50 : vector<16x8xf32>
    %cst_23 = arith.constant dense<0.000000e+00> : vector<16xf32>
    %52 = vector.multi_reduction <add>, %51, %cst_23 [1] : vector<16x8xf32> to vector<16xf32>
    %53 = vector.shape_cast %52 : vector<16xf32> to vector<16x1xf32>
    %54 = tpu.reciprocal %53 {approx = true} : vector<16x1xf32> -> vector<16x1xf32>
    %55 = vector.broadcast %54 : vector<16x1xf32> to vector<16x8xf32>
    %56 = arith.mulf %51, %55 : vector<16x8xf32>
    %57 = arith.index_cast %c1_i32 : i32 to index
    %c0_24 = arith.constant 0 : index
    %c0_25 = arith.constant 0 : index
    %58 = vector.load %arg6[%57, %c0_24, %c0_25] : memref<8x16x8xf32, #tpu.memory_space<vmem>>, vector<1x16x8xf32>
    %59 = vector.shape_cast %58 : vector<1x16x8xf32> to vector<16x8xf32>
    %60 = vector.shape_cast %56 : vector<16x8xf32> to vector<1x16x8xf32>
    tpu.vector_store %arg6[%57, %c0_24, %c0_25], %60 {strides = array<i32>} : memref<8x16x8xf32, #tpu.memory_space<vmem>>, vector<1x16x8xf32>,
    %c2_i32 = arith.constant 2 : i32
    %61 = arith.index_cast %c2_i32 : i32 to index
    %c0_26 = arith.constant 0 : index
    %c0_27 = arith.constant 0 : index
    %62 = vector.load %arg2[%61, %c0_26, %c0_27] : memref<8x16x32xbf16, #tpu.memory_space<vmem>>, vector<1x16x32xbf16>
    %63 = vector.shape_cast %62 : vector<1x16x32xbf16> to vector<16x32xbf16>
    %64 = arith.extf %63 : vector<16x32xbf16> to vector<16x32xf32>
    %65 = arith.truncf %56 : vector<16x8xf32> to vector<16x8xbf16>
    %cst_28 = arith.constant dense<0.000000e+00> : vector<16x32xf32>
    %66 = tpu.matmul %65, %3, %cst_28 {dimension_numbers = #tpu.dot_dimension_numbers<[1], [0], [0], [1], [0, 0, 1, 1], [], []>} : vector<16x8xbf16>, vector<8x32xbf16>, vector<16x32xf32> -> vector<16x32xf32>
    %67 = arith.addf %64, %66 : vector<16x32xf32>
    %cst_29 = arith.constant 0.000000e+00 : f32
    %68 = vector.broadcast %cst_29 : f32 to vector<16x32xf32>
    %69 = arith.maximumf %67, %68 : vector<16x32xf32>
    %70 = arith.truncf %69 : vector<16x32xf32> to vector<16x32xbf16>
    %cst_30 = arith.constant dense<0.000000e+00> : vector<16x8xf32>
    %71 = tpu.matmul %70, %4, %cst_30 {dimension_numbers = #tpu.dot_dimension_numbers<[1], [0], [0], [1], [0, 0, 1, 1], [], []>} : vector<16x32xbf16>, vector<32x8xbf16>, vector<16x8xf32> -> vector<16x8xf32>
    %72 = vector.broadcast %5 : vector<1x8xf32> to vector<16x8xf32>
    %73 = arith.addf %71, %72 : vector<16x8xf32>
    %cst_31 = arith.constant dense<0xFF800000> : vector<16xf32>
    %74 = vector.multi_reduction <maximumf>, %73, %cst_31 [1] : vector<16x8xf32> to vector<16xf32>
    %75 = vector.shape_cast %74 : vector<16xf32> to vector<16x1xf32>
    %76 = vector.broadcast %75 : vector<16x1xf32> to vector<16x8xf32>
    %77 = arith.subf %73, %76 : vector<16x8xf32>
    %78 = math.exp %77 : vector<16x8xf32>
    %cst_32 = arith.constant dense<0.000000e+00> : vector<16xf32>
    %79 = vector.multi_reduction <add>, %78, %cst_32 [1] : vector<16x8xf32> to vector<16xf32>
    %80 = vector.shape_cast %79 : vector<16xf32> to vector<16x1xf32>
    %81 = tpu.reciprocal %80 {approx = true} : vector<16x1xf32> -> vector<16x1xf32>
    %82 = vector.broadcast %81 : vector<16x1xf32> to vector<16x8xf32>
    %83 = arith.mulf %78, %82 : vector<16x8xf32>
    %84 = arith.index_cast %c2_i32 : i32 to index
    %c0_33 = arith.constant 0 : index
    %c0_34 = arith.constant 0 : index
    %85 = vector.load %arg6[%84, %c0_33, %c0_34] : memref<8x16x8xf32, #tpu.memory_space<vmem>>, vector<1x16x8xf32>
    %86 = vector.shape_cast %85 : vector<1x16x8xf32> to vector<16x8xf32>
    %87 = vector.shape_cast %83 : vector<16x8xf32> to vector<1x16x8xf32>
    tpu.vector_store %arg6[%84, %c0_33, %c0_34], %87 {strides = array<i32>} : memref<8x16x8xf32, #tpu.memory_space<vmem>>, vector<1x16x8xf32>,
    %c3_i32 = arith.constant 3 : i32
    %88 = arith.index_cast %c3_i32 : i32 to index
    %c0_35 = arith.constant 0 : index
    %c0_36 = arith.constant 0 : index
    %89 = vector.load %arg2[%88, %c0_35, %c0_36] : memref<8x16x32xbf16, #tpu.memory_space<vmem>>, vector<1x16x32xbf16>
    %90 = vector.shape_cast %89 : vector<1x16x32xbf16> to vector<16x32xbf16>
    %91 = arith.extf %90 : vector<16x32xbf16> to vector<16x32xf32>
    %92 = arith.truncf %83 : vector<16x8xf32> to vector<16x8xbf16>
    %cst_37 = arith.constant dense<0.000000e+00> : vector<16x32xf32>
    %93 = tpu.matmul %92, %3, %cst_37 {dimension_numbers = #tpu.dot_dimension_numbers<[1], [0], [0], [1], [0, 0, 1, 1], [], []>} : vector<16x8xbf16>, vector<8x32xbf16>, vector<16x32xf32> -> vector<16x32xf32>
    %94 = arith.addf %91, %93 : vector<16x32xf32>
    %cst_38 = arith.constant 0.000000e+00 : f32
    %95 = vector.broadcast %cst_38 : f32 to vector<16x32xf32>
    %96 = arith.maximumf %94, %95 : vector<16x32xf32>
    %97 = arith.truncf %96 : vector<16x32xf32> to vector<16x32xbf16>
    %cst_39 = arith.constant dense<0.000000e+00> : vector<16x8xf32>
    %98 = tpu.matmul %97, %4, %cst_39 {dimension_numbers = #tpu.dot_dimension_numbers<[1], [0], [0], [1], [0, 0, 1, 1], [], []>} : vector<16x32xbf16>, vector<32x8xbf16>, vector<16x8xf32> -> vector<16x8xf32>
    %99 = vector.broadcast %5 : vector<1x8xf32> to vector<16x8xf32>
    %100 = arith.addf %98, %99 : vector<16x8xf32>
    %cst_40 = arith.constant dense<0xFF800000> : vector<16xf32>
    %101 = vector.multi_reduction <maximumf>, %100, %cst_40 [1] : vector<16x8xf32> to vector<16xf32>
    %102 = vector.shape_cast %101 : vector<16xf32> to vector<16x1xf32>
    %103 = vector.broadcast %102 : vector<16x1xf32> to vector<16x8xf32>
    %104 = arith.subf %100, %103 : vector<16x8xf32>
    %105 = math.exp %104 : vector<16x8xf32>
    %cst_41 = arith.constant dense<0.000000e+00> : vector<16xf32>
    %106 = vector.multi_reduction <add>, %105, %cst_41 [1] : vector<16x8xf32> to vector<16xf32>
    %107 = vector.shape_cast %106 : vector<16xf32> to vector<16x1xf32>
    %108 = tpu.reciprocal %107 {approx = true} : vector<16x1xf32> -> vector<16x1xf32>
    %109 = vector.broadcast %108 : vector<16x1xf32> to vector<16x8xf32>
    %110 = arith.mulf %105, %109 : vector<16x8xf32>
    %111 = arith.index_cast %c3_i32 : i32 to index
    %c0_42 = arith.constant 0 : index
    %c0_43 = arith.constant 0 : index
    %112 = vector.load %arg6[%111, %c0_42, %c0_43] : memref<8x16x8xf32, #tpu.memory_space<vmem>>, vector<1x16x8xf32>
    %113 = vector.shape_cast %112 : vector<1x16x8xf32> to vector<16x8xf32>
    %114 = vector.shape_cast %110 : vector<16x8xf32> to vector<1x16x8xf32>
    tpu.vector_store %arg6[%111, %c0_42, %c0_43], %114 {strides = array<i32>} : memref<8x16x8xf32, #tpu.memory_space<vmem>>, vector<1x16x8xf32>,
    %c4_i32 = arith.constant 4 : i32
    %115 = arith.index_cast %c4_i32 : i32 to index
    %c0_44 = arith.constant 0 : index
    %c0_45 = arith.constant 0 : index
    %116 = vector.load %arg2[%115, %c0_44, %c0_45] : memref<8x16x32xbf16, #tpu.memory_space<vmem>>, vector<1x16x32xbf16>
    %117 = vector.shape_cast %116 : vector<1x16x32xbf16> to vector<16x32xbf16>
    %118 = arith.extf %117 : vector<16x32xbf16> to vector<16x32xf32>
    %119 = arith.truncf %110 : vector<16x8xf32> to vector<16x8xbf16>
    %cst_46 = arith.constant dense<0.000000e+00> : vector<16x32xf32>
    %120 = tpu.matmul %119, %3, %cst_46 {dimension_numbers = #tpu.dot_dimension_numbers<[1], [0], [0], [1], [0, 0, 1, 1], [], []>} : vector<16x8xbf16>, vector<8x32xbf16>, vector<16x32xf32> -> vector<16x32xf32>
    %121 = arith.addf %118, %120 : vector<16x32xf32>
    %cst_47 = arith.constant 0.000000e+00 : f32
    %122 = vector.broadcast %cst_47 : f32 to vector<16x32xf32>
    %123 = arith.maximumf %121, %122 : vector<16x32xf32>
    %124 = arith.truncf %123 : vector<16x32xf32> to vector<16x32xbf16>
    %cst_48 = arith.constant dense<0.000000e+00> : vector<16x8xf32>
    %125 = tpu.matmul %124, %4, %cst_48 {dimension_numbers = #tpu.dot_dimension_numbers<[1], [0], [0], [1], [0, 0, 1, 1], [], []>} : vector<16x32xbf16>, vector<32x8xbf16>, vector<16x8xf32> -> vector<16x8xf32>
    %126 = vector.broadcast %5 : vector<1x8xf32> to vector<16x8xf32>
    %127 = arith.addf %125, %126 : vector<16x8xf32>
    %cst_49 = arith.constant dense<0xFF800000> : vector<16xf32>
    %128 = vector.multi_reduction <maximumf>, %127, %cst_49 [1] : vector<16x8xf32> to vector<16xf32>
    %129 = vector.shape_cast %128 : vector<16xf32> to vector<16x1xf32>
    %130 = vector.broadcast %129 : vector<16x1xf32> to vector<16x8xf32>
    %131 = arith.subf %127, %130 : vector<16x8xf32>
    %132 = math.exp %131 : vector<16x8xf32>
    %cst_50 = arith.constant dense<0.000000e+00> : vector<16xf32>
    %133 = vector.multi_reduction <add>, %132, %cst_50 [1] : vector<16x8xf32> to vector<16xf32>
    %134 = vector.shape_cast %133 : vector<16xf32> to vector<16x1xf32>
    %135 = tpu.reciprocal %134 {approx = true} : vector<16x1xf32> -> vector<16x1xf32>
    %136 = vector.broadcast %135 : vector<16x1xf32> to vector<16x8xf32>
    %137 = arith.mulf %132, %136 : vector<16x8xf32>
    %138 = arith.index_cast %c4_i32 : i32 to index
    %c0_51 = arith.constant 0 : index
    %c0_52 = arith.constant 0 : index
    %139 = vector.load %arg6[%138, %c0_51, %c0_52] : memref<8x16x8xf32, #tpu.memory_space<vmem>>, vector<1x16x8xf32>
    %140 = vector.shape_cast %139 : vector<1x16x8xf32> to vector<16x8xf32>
    %141 = vector.shape_cast %137 : vector<16x8xf32> to vector<1x16x8xf32>
    tpu.vector_store %arg6[%138, %c0_51, %c0_52], %141 {strides = array<i32>} : memref<8x16x8xf32, #tpu.memory_space<vmem>>, vector<1x16x8xf32>,
    %c5_i32 = arith.constant 5 : i32
    %142 = arith.index_cast %c5_i32 : i32 to index
    %c0_53 = arith.constant 0 : index
    %c0_54 = arith.constant 0 : index
    %143 = vector.load %arg2[%142, %c0_53, %c0_54] : memref<8x16x32xbf16, #tpu.memory_space<vmem>>, vector<1x16x32xbf16>
    %144 = vector.shape_cast %143 : vector<1x16x32xbf16> to vector<16x32xbf16>
    %145 = arith.extf %144 : vector<16x32xbf16> to vector<16x32xf32>
    %146 = arith.truncf %137 : vector<16x8xf32> to vector<16x8xbf16>
    %cst_55 = arith.constant dense<0.000000e+00> : vector<16x32xf32>
    %147 = tpu.matmul %146, %3, %cst_55 {dimension_numbers = #tpu.dot_dimension_numbers<[1], [0], [0], [1], [0, 0, 1, 1], [], []>} : vector<16x8xbf16>, vector<8x32xbf16>, vector<16x32xf32> -> vector<16x32xf32>
    %148 = arith.addf %145, %147 : vector<16x32xf32>
    %cst_56 = arith.constant 0.000000e+00 : f32
    %149 = vector.broadcast %cst_56 : f32 to vector<16x32xf32>
    %150 = arith.maximumf %148, %149 : vector<16x32xf32>
    %151 = arith.truncf %150 : vector<16x32xf32> to vector<16x32xbf16>
    %cst_57 = arith.constant dense<0.000000e+00> : vector<16x8xf32>
    %152 = tpu.matmul %151, %4, %cst_57 {dimension_numbers = #tpu.dot_dimension_numbers<[1], [0], [0], [1], [0, 0, 1, 1], [], []>} : vector<16x32xbf16>, vector<32x8xbf16>, vector<16x8xf32> -> vector<16x8xf32>
    %153 = vector.broadcast %5 : vector<1x8xf32> to vector<16x8xf32>
    %154 = arith.addf %152, %153 : vector<16x8xf32>
    %cst_58 = arith.constant dense<0xFF800000> : vector<16xf32>
    %155 = vector.multi_reduction <maximumf>, %154, %cst_58 [1] : vector<16x8xf32> to vector<16xf32>
    %156 = vector.shape_cast %155 : vector<16xf32> to vector<16x1xf32>
    %157 = vector.broadcast %156 : vector<16x1xf32> to vector<16x8xf32>
    %158 = arith.subf %154, %157 : vector<16x8xf32>
    %159 = math.exp %158 : vector<16x8xf32>
    %cst_59 = arith.constant dense<0.000000e+00> : vector<16xf32>
    %160 = vector.multi_reduction <add>, %159, %cst_59 [1] : vector<16x8xf32> to vector<16xf32>
    %161 = vector.shape_cast %160 : vector<16xf32> to vector<16x1xf32>
    %162 = tpu.reciprocal %161 {approx = true} : vector<16x1xf32> -> vector<16x1xf32>
    %163 = vector.broadcast %162 : vector<16x1xf32> to vector<16x8xf32>
    %164 = arith.mulf %159, %163 : vector<16x8xf32>
    %165 = arith.index_cast %c5_i32 : i32 to index
    %c0_60 = arith.constant 0 : index
    %c0_61 = arith.constant 0 : index
    %166 = vector.load %arg6[%165, %c0_60, %c0_61] : memref<8x16x8xf32, #tpu.memory_space<vmem>>, vector<1x16x8xf32>
    %167 = vector.shape_cast %166 : vector<1x16x8xf32> to vector<16x8xf32>
    %168 = vector.shape_cast %164 : vector<16x8xf32> to vector<1x16x8xf32>
    tpu.vector_store %arg6[%165, %c0_60, %c0_61], %168 {strides = array<i32>} : memref<8x16x8xf32, #tpu.memory_space<vmem>>, vector<1x16x8xf32>,
    %c6_i32 = arith.constant 6 : i32
    %169 = arith.index_cast %c6_i32 : i32 to index
    %c0_62 = arith.constant 0 : index
    %c0_63 = arith.constant 0 : index
    %170 = vector.load %arg2[%169, %c0_62, %c0_63] : memref<8x16x32xbf16, #tpu.memory_space<vmem>>, vector<1x16x32xbf16>
    %171 = vector.shape_cast %170 : vector<1x16x32xbf16> to vector<16x32xbf16>
    %172 = arith.extf %171 : vector<16x32xbf16> to vector<16x32xf32>
    %173 = arith.truncf %164 : vector<16x8xf32> to vector<16x8xbf16>
    %cst_64 = arith.constant dense<0.000000e+00> : vector<16x32xf32>
    %174 = tpu.matmul %173, %3, %cst_64 {dimension_numbers = #tpu.dot_dimension_numbers<[1], [0], [0], [1], [0, 0, 1, 1], [], []>} : vector<16x8xbf16>, vector<8x32xbf16>, vector<16x32xf32> -> vector<16x32xf32>
    %175 = arith.addf %172, %174 : vector<16x32xf32>
    %cst_65 = arith.constant 0.000000e+00 : f32
    %176 = vector.broadcast %cst_65 : f32 to vector<16x32xf32>
    %177 = arith.maximumf %175, %176 : vector<16x32xf32>
    %178 = arith.truncf %177 : vector<16x32xf32> to vector<16x32xbf16>
    %cst_66 = arith.constant dense<0.000000e+00> : vector<16x8xf32>
    %179 = tpu.matmul %178, %4, %cst_66 {dimension_numbers = #tpu.dot_dimension_numbers<[1], [0], [0], [1], [0, 0, 1, 1], [], []>} : vector<16x32xbf16>, vector<32x8xbf16>, vector<16x8xf32> -> vector<16x8xf32>
    %180 = vector.broadcast %5 : vector<1x8xf32> to vector<16x8xf32>
    %181 = arith.addf %179, %180 : vector<16x8xf32>
    %cst_67 = arith.constant dense<0xFF800000> : vector<16xf32>
    %182 = vector.multi_reduction <maximumf>, %181, %cst_67 [1] : vector<16x8xf32> to vector<16xf32>
    %183 = vector.shape_cast %182 : vector<16xf32> to vector<16x1xf32>
    %184 = vector.broadcast %183 : vector<16x1xf32> to vector<16x8xf32>
    %185 = arith.subf %181, %184 : vector<16x8xf32>
    %186 = math.exp %185 : vector<16x8xf32>
    %cst_68 = arith.constant dense<0.000000e+00> : vector<16xf32>
    %187 = vector.multi_reduction <add>, %186, %cst_68 [1] : vector<16x8xf32> to vector<16xf32>
    %188 = vector.shape_cast %187 : vector<16xf32> to vector<16x1xf32>
    %189 = tpu.reciprocal %188 {approx = true} : vector<16x1xf32> -> vector<16x1xf32>
    %190 = vector.broadcast %189 : vector<16x1xf32> to vector<16x8xf32>
    %191 = arith.mulf %186, %190 : vector<16x8xf32>
    %192 = arith.index_cast %c6_i32 : i32 to index
    %c0_69 = arith.constant 0 : index
    %c0_70 = arith.constant 0 : index
    %193 = vector.load %arg6[%192, %c0_69, %c0_70] : memref<8x16x8xf32, #tpu.memory_space<vmem>>, vector<1x16x8xf32>
    %194 = vector.shape_cast %193 : vector<1x16x8xf32> to vector<16x8xf32>
    %195 = vector.shape_cast %191 : vector<16x8xf32> to vector<1x16x8xf32>
    tpu.vector_store %arg6[%192, %c0_69, %c0_70], %195 {strides = array<i32>} : memref<8x16x8xf32, #tpu.memory_space<vmem>>, vector<1x16x8xf32>,
    %c7_i32 = arith.constant 7 : i32
    %196 = arith.index_cast %c7_i32 : i32 to index
    %c0_71 = arith.constant 0 : index
    %c0_72 = arith.constant 0 : index
    %197 = vector.load %arg2[%196, %c0_71, %c0_72] : memref<8x16x32xbf16, #tpu.memory_space<vmem>>, vector<1x16x32xbf16>
    %198 = vector.shape_cast %197 : vector<1x16x32xbf16> to vector<16x32xbf16>
    %199 = arith.extf %198 : vector<16x32xbf16> to vector<16x32xf32>
    %200 = arith.truncf %191 : vector<16x8xf32> to vector<16x8xbf16>
    %cst_73 = arith.constant dense<0.000000e+00> : vector<16x32xf32>
    %201 = tpu.matmul %200, %3, %cst_73 {dimension_numbers = #tpu.dot_dimension_numbers<[1], [0], [0], [1], [0, 0, 1, 1], [], []>} : vector<16x8xbf16>, vector<8x32xbf16>, vector<16x32xf32> -> vector<16x32xf32>
    %202 = arith.addf %199, %201 : vector<16x32xf32>
    %cst_74 = arith.constant 0.000000e+00 : f32
    %203 = vector.broadcast %cst_74 : f32 to vector<16x32xf32>
    %204 = arith.maximumf %202, %203 : vector<16x32xf32>
    %205 = arith.truncf %204 : vector<16x32xf32> to vector<16x32xbf16>
    %cst_75 = arith.constant dense<0.000000e+00> : vector<16x8xf32>
    %206 = tpu.matmul %205, %4, %cst_75 {dimension_numbers = #tpu.dot_dimension_numbers<[1], [0], [0], [1], [0, 0, 1, 1], [], []>} : vector<16x32xbf16>, vector<32x8xbf16>, vector<16x8xf32> -> vector<16x8xf32>
    %207 = vector.broadcast %5 : vector<1x8xf32> to vector<16x8xf32>
    %208 = arith.addf %206, %207 : vector<16x8xf32>
    %cst_76 = arith.constant dense<0xFF800000> : vector<16xf32>
    %209 = vector.multi_reduction <maximumf>, %208, %cst_76 [1] : vector<16x8xf32> to vector<16xf32>
    %210 = vector.shape_cast %209 : vector<16xf32> to vector<16x1xf32>
    %211 = vector.broadcast %210 : vector<16x1xf32> to vector<16x8xf32>
    %212 = arith.subf %208, %211 : vector<16x8xf32>
    %213 = math.exp %212 : vector<16x8xf32>
    %cst_77 = arith.constant dense<0.000000e+00> : vector<16xf32>
    %214 = vector.multi_reduction <add>, %213, %cst_77 [1] : vector<16x8xf32> to vector<16xf32>
    %215 = vector.shape_cast %214 : vector<16xf32> to vector<16x1xf32>
    %216 = tpu.reciprocal %215 {approx = true} : vector<16x1xf32> -> vector<16x1xf32>
    %217 = vector.broadcast %216 : vector<16x1xf32> to vector<16x8xf32>
    %218 = arith.mulf %213, %217 : vector<16x8xf32>
    %219 = arith.index_cast %c7_i32 : i32 to index
    %c0_78 = arith.constant 0 : index
    %c0_79 = arith.constant 0 : index
    %220 = vector.load %arg6[%219, %c0_78, %c0_79] : memref<8x16x8xf32, #tpu.memory_space<vmem>>, vector<1x16x8xf32>
    %221 = vector.shape_cast %220 : vector<1x16x8xf32> to vector<16x8xf32>
    %222 = vector.shape_cast %218 : vector<16x8xf32> to vector<1x16x8xf32>
    tpu.vector_store %arg6[%219, %c0_78, %c0_79], %222 {strides = array<i32>} : memref<8x16x8xf32, #tpu.memory_space<vmem>>, vector<1x16x8xf32>,
    %c8_i32 = arith.constant 8 : i32
    %c0_80 = arith.constant 0 : index
    %c0_81 = arith.constant 0 : index
    %223 = vector.load %arg7[%c0_80, %c0_81] : memref<16x8xf32, #tpu.memory_space<vmem>>, vector<16x8xf32>
    tpu.vector_store %arg7[%c0_80, %c0_81], %218 {strides = array<i32>} : memref<16x8xf32, #tpu.memory_space<vmem>>, vector<16x8xf32>,
    return
  }
  func.func @transform_0(%arg0: i32, %arg1: i32) -> (i32, i32, i32) {
    %c0_i32 = arith.constant 0 : i32
    %c0_i32_0 = arith.constant 0 : i32
    return %arg1, %arg0, %c0_i32 : i32, i32, i32
  }
  func.func @transform_1(%arg0: i32, %arg1: i32) -> (i32, i32) {
    %c0_i32 = arith.constant 0 : i32
    %c0_i32_0 = arith.constant 0 : i32
    %c0_i32_1 = arith.constant 0 : i32
    return %c0_i32, %c0_i32_0 : i32, i32
  }
  func.func @transform_2(%arg0: i32, %arg1: i32) -> (i32, i32) {
    %c0_i32 = arith.constant 0 : i32
    %c0_i32_0 = arith.constant 0 : i32
    %c0_i32_1 = arith.constant 0 : i32
    return %c0_i32, %c0_i32_0 : i32, i32
  }
  func.func @transform_3(%arg0: i32, %arg1: i32) -> (i32, i32) {
    %c0_i32 = arith.constant 0 : i32
    %c0_i32_0 = arith.constant 0 : i32
    %c0_i32_1 = arith.constant 0 : i32
    return %c0_i32, %c0_i32_0 : i32, i32
  }
  func.func @transform_4(%arg0: i32, %arg1: i32) -> (i32, i32, i32) {
    %c0_i32 = arith.constant 0 : i32
    %c0_i32_0 = arith.constant 0 : i32
    return %arg1, %arg0, %c0_i32 : i32, i32, i32
  }
}

</mosaic_0001>

<bundles_post_ra>
// kernel: srrnn_forward.1
= control target key start
LH: loop header
LB: loop body
LE: loop exit
PB: predicated region body
PF: predicated region fallthrough
CT: control target
= control target key end

     0   :  { %vm42_vm0 = vcmask 1043456   ;;  %vm22_vm1 = vcmask 64512   ;;  %v1359_v0 = vmov 0.0   ;;  %vm1360_vm2 = vmmov 0   ;;  %s1644_s1 = inlined_call_operand.vmem [shape: bf16[8,32], index: 1, kind: input, shape index: {}]   ;;  %s1645_s2 = inlined_call_operand.vmem [shape: bf16[32,8], index: 2, kind: input, shape index: {}]   ;;  %s1646_s0 = inlined_call_operand.vmem [shape: bf16[8,16,32], index: 0, kind: input, shape index: {}]   ;;  %s1647_s3 = inlined_call_operand.vmem [shape: f32[1,8], index: 3, kind: input, shape index: {}]   ;;  %s1648_s4 = inlined_call_operand.vmem [shape: f32[8,16,8], index: 4, kind: output, shape index: {}]  }
   0x1   :  { %1179 = vmatprep.subr.bf16.mxu0 %v1359_v0  ;;  %v25_v1 = vld [vmem:[%s1644_s1] sm:$0xf]  ;;  %1181 = vmatprep.mubr.msk.bf16.mxu0 %vm1360_vm2, %v1359_v0  ;;  %23 = vst.msk [vmem:[#allocation2] sm:$0xff] %vm22_vm1, %v1359_v0  ;;  %24 = vst.msk [vmem:[#allocation2 + $0x8] sm:$0xff] %vm22_vm1, %v1359_v0  ;;  %v1418_v7 = vld [vmem:[%s1645_s2 + $0x8] sm:$0xff]   ;;  %vm110_vm3 = vcmask 261120  }
   0x2   :  { %v1396_v2 = vsel %vm42_vm0, %v25_v1, 0  ;;  %1185 = vmatprep.subr.bf16.mxu1 %v1359_v0  ;;  %1189 = vmatprep.mubr.msk.bf16.mxu1 %vm1360_vm2, %v1359_v0  ;;  %v1411_v6 = vld [vmem:[%s1645_s2] sm:$0xff]   ;;  %v1132_v46 = vld [vmem:[%s1646_s0 + $0x8] sm:$0xff]  }
   0x3   :  { %1180 = vmatpush3.bf16.msra.mxu0 %v1396_v2  ;;  %1186 = vmatpush3.bf16.msra.mxu1 %v1411_v6  ;;  %v1101_v8 = vld [vmem:[%s1646_s0] sm:$0xff]   ;;  %v1106_v47 = vunpack.c.l.bf16 %v1132_v46  ;;  %v1107_v48 = vunpack.c.h.bf16 %v1132_v46 }
   0x4   :  { %1193 = vmatprep.subr.bf16.mxu0 %v1359_v0  ;;  %1187 = vmatprep.subr.bf16.mxu1 %v1359_v0  ;;  %v1102_v9 = vunpack.c.l.bf16 %v1101_v8  ;;  %v1103_v10 = vunpack.c.h.bf16 %v1101_v8  ;;  %v1435_v20 = vld [vmem:[%s1647_s3] ss:$0 sm:$0xff] }
   0x7   :  { %1188 = vmatpush3.bf16.msra.mxu1 %v1418_v7 }
   0x8   :  { %v31_v3 = vld [vmem:[#allocation2] sm:$0xff]  ;;  %v32_v4 = vld [vmem:[#allocation2 + $0x8] sm:$0xff]  ;;  %1199 = vmatprep.subr.bf16.mxu1 %v1359_v0 }
   0x9   :  { %v37_v5 = vpack.c.bf16 %v32_v4, %v31_v3 }
   0xb   :  { %1182 = vmatmul.mubr.msk.bf16.vlgmr.msra.gmra.mrb[0].mxu0 %vm22_vm1, %v37_v5 }
   0xc   :  { %1194 = vmatpush3.bf16.msra.mxu0 %v1396_v2  ;;  %1195 = vmatprep.mubr.msk.bf16.mxu0 %vm1360_vm2, %v1359_v0 }
   0xd   :  { %1207 = vmatprep.subr.bf16.mxu0 %v1359_v0 }
  0xde   :  { %v80_v11 = vpop.f32.mrb[0].mxu0 }
  0xdf   :  { %v87_v12 = vadd.f32 %v1102_v9, %v80_v11  ;;  %v1183_v13 = vpop.f32.mrb[1].mxu0 }
  0xe0   :  { %v83_v14 = vpop.f32.mrb[2].mxu0 }
  0xe1   :  { %v88_v15 = vadd.f32 %v1103_v10, %v83_v14  ;;  %v1184_v16 = vpop.f32.mrb[3].mxu0  ;;  %v89_v17 = vmax.f32 %v87_v12, 0.0 }
  0xe3   :  { %v90_v18 = vmax.f32 %v88_v15, 0.0 }
  0xe5   :  { %v91_v19 = vpack.c.bf16 %v90_v18, %v89_v17 }
  0xe7   :  { %1190 = vmatmul.mubr.msk.bf16.vlgmr.msra.gmra.mrb[0].mxu1 %vm110_vm3, %v91_v19 }
  0xe8   :  { %1200 = vmatpush3.bf16.msra.mxu1 %v1411_v6  ;;  %1203 = vmatprep.mubr.msk.bf16.mxu1 %vm1360_vm2, %v1359_v0 }
  0xe9   :  { %1201 = vmatprep.subr.bf16.mxu1 %v1359_v0 }
  0xec   :  { %1202 = vmatpush3.bf16.msra.mxu1 %v1418_v7 }
  0xed   :  { %1213 = vmatprep.subr.bf16.mxu1 %v1359_v0 }
 0x1ba   :  { %v148_v21 = vpop.f32.mrb[0].mxu1 }
 0x1bb   :  { %v149_v22 = vadd.f32 %v1435_v20, %v148_v21  ;;  %v1191_v23 = vpop.f32.mrb[1].mxu1 }
 0x1bc   :  { %v151_v24 = vpop.f32.mrb[2].mxu1 }
 0x1bd   :  { %v152_v25 = vadd.f32 %v1435_v20, %v151_v24  ;;  %v1192_v26 = vpop.f32.mrb[3].mxu1  ;;  %v155_v27 = vsel %vm22_vm1, %v149_v22, -inf  ;;  %v1133_v24 = vld [vmem:[%s1646_s0 + $0x10] sm:$0xff]  }
 0x1be   :  { %156 = vmax.xlane.f32.xlu0 %v155_v27  ;;  %v1111_v26 = vunpack.c.h.bf16 %v1133_v24 }
 0x1bf   :  { %v158_v28 = vsel %vm22_vm1, %v152_v25, -inf }
 0x1c2   :  { %159 = vmax.xlane.f32.xlu0 %v158_v28 }
 0x24b   :  { %v157_v29 = vpop.xlane.xlu0 %156 }
 0x24c   :  { %v161_v30 = vsub.f32 %v149_v22, %v157_v29 }
 0x24e   :  { %v163_v31 = vmul.f32 1.442695, %v161_v30 }
 0x24f   :  { %v160_v32 = vpop.xlane.xlu0 %159 }
 0x250   :  { %1295 = vpow2.f32 %v163_v31  ;;  %v162_v33 = vsub.f32 %v152_v25, %v160_v32  ;;  %v1110_v25 = vunpack.c.l.bf16 %v1133_v24 }
 0x252   :  { %v165_v34 = vmul.f32 1.442695, %v162_v33 }
 0x254   :  { %1297 = vpow2.f32 %v165_v34 }
 0x25a   :  { %v1296_v35 = vpop.eup %1295 }
 0x25b   :  { %v167_v36 = vsel %vm22_vm1, %v1296_v35, 0.0 }
 0x25c   :  { %168 = vadd.xlane.f32.xlu1 %v167_v36 }
 0x25e   :  { %v1298_v37 = vpop.eup %1297 }
 0x25f   :  { %v170_v38 = vsel %vm22_vm1, %v1298_v37, 0.0 }
 0x260   :  { %171 = vadd.xlane.f32.xlu1 %v170_v38 }
 0x2e9   :  { %v169_v39 = vpop.xlane.xlu1 %168 }
 0x2ea   :  { %1299 = vrcp.f32 %v169_v39 }
 0x2ed   :  { %v172_v40 = vpop.xlane.xlu1 %171 }
 0x2ee   :  { %1301 = vrcp.f32 %v172_v40 }
 0x2f4   :  { %v1300_v41 = vpop.eup %1299 }
 0x2f5   :  { %v175_v42 = vmul.f32 %v1300_v41, %v1296_v35 }
 0x2f7   :  { %177 = vst.msk [vmem:[%s1648_s4] sm:$0xff] %vm22_vm1, %v175_v42 }
 0x2f8   :  { %v1302_v43 = vpop.eup %1301 }
 0x2f9   :  { %v176_v44 = vmul.f32 %v1302_v43, %v1298_v37 }
 0x2fb   :  { %178 = vst.msk [vmem:[%s1648_s4 + $0x8] sm:$0xff] %vm22_vm1, %v176_v44  ;;  %v184_v45 = vpack.c.bf16 %v176_v44, %v175_v42 }
 0x2fd   :  { %1196 = vmatmul.mubr.msk.bf16.vlgmr.msra.gmra.mrb[4].mxu0 %vm22_vm1, %v184_v45 }
 0x2fe   :  { %1208 = vmatpush3.bf16.msra.mxu0 %v1396_v2  ;;  %1209 = vmatprep.mubr.msk.bf16.mxu0 %vm1360_vm2, %v1359_v0 }
 0x2ff   :  { %1221 = vmatprep.subr.bf16.mxu0 %v1359_v0 }
 0x3d0   :  { %v222_v49 = vpop.f32.mrb[4].mxu0 }
 0x3d1   :  { %v229_v50 = vadd.f32 %v1106_v47, %v222_v49  ;;  %v1197_v51 = vpop.f32.mrb[5].mxu0 }
 0x3d2   :  { %v225_v52 = vpop.f32.mrb[6].mxu0 }
 0x3d3   :  { %v230_v53 = vadd.f32 %v1107_v48, %v225_v52  ;;  %v1198_v54 = vpop.f32.mrb[7].mxu0  ;;  %v231_v55 = vmax.f32 %v229_v50, 0.0 }
 0x3d5   :  { %v232_v56 = vmax.f32 %v230_v53, 0.0 }
 0x3d7   :  { %v233_v57 = vpack.c.bf16 %v232_v56, %v231_v55 }
 0x3d9   :  { %1204 = vmatmul.mubr.msk.bf16.vlgmr.msra.gmra.mrb[4].mxu1 %vm110_vm3, %v233_v57 }
 0x3da   :  { %1214 = vmatpush3.bf16.msra.mxu1 %v1411_v6  ;;  %1217 = vmatprep.mubr.msk.bf16.mxu1 %vm1360_vm2, %v1359_v0 }
 0x3db   :  { %1215 = vmatprep.subr.bf16.mxu1 %v1359_v0 }
 0x3de   :  { %1216 = vmatpush3.bf16.msra.mxu1 %v1418_v7 }
 0x3df   :  { %1227 = vmatprep.subr.bf16.mxu1 %v1359_v0 }
 0x4ac   :  { %v271_v58 = vpop.f32.mrb[4].mxu1 }
 0x4ad   :  { %v272_v59 = vadd.f32 %v1435_v20, %v271_v58  ;;  %v1205_v60 = vpop.f32.mrb[5].mxu1 }
 0x4ae   :  { %v274_v61 = vpop.f32.mrb[6].mxu1 }
 0x4af   :  { %v275_v62 = vadd.f32 %v1435_v20, %v274_v61  ;;  %v1206_v63 = vpop.f32.mrb[7].mxu1  ;;  %v278_v1 = vsel %vm22_vm1, %v272_v59, -inf  ;;  %v1134_v61 = vld [vmem:[%s1646_s0 + $0x18] sm:$0xff]  }
 0x4b0   :  { %279 = vmax.xlane.f32.xlu0 %v278_v1  ;;  %v1115_v63 = vunpack.c.h.bf16 %v1134_v61 }
 0x4b1   :  { %v281_v3 = vsel %vm22_vm1, %v275_v62, -inf }
 0x4b2   :  { %282 = vmax.xlane.f32.xlu1 %v281_v3 }
 0x53d   :  { %v280_v4 = vpop.xlane.xlu0 %279 }
 0x53e   :  { %v284_v5 = vsub.f32 %v272_v59, %v280_v4 }
 0x53f   :  { %v283_v8 = vpop.xlane.xlu1 %282 }
 0x540   :  { %v286_v9 = vmul.f32 1.442695, %v284_v5  ;;  %v285_v10 = vsub.f32 %v275_v62, %v283_v8  ;;  %v1114_v62 = vunpack.c.l.bf16 %v1134_v61 }
 0x542   :  { %1303 = vpow2.f32 %v286_v9  ;;  %v288_v11 = vmul.f32 1.442695, %v285_v10 }
 0x544   :  { %1305 = vpow2.f32 %v288_v11 }
 0x54c   :  { %v1304_v12 = vpop.eup %1303 }
 0x54d   :  { %v290_v13 = vsel %vm22_vm1, %v1304_v12, 0.0 }
 0x54e   :  { %v1306_v14 = vpop.eup %1305  ;;  %291 = vadd.xlane.f32.xlu0 %v290_v13 }
 0x54f   :  { %v293_v15 = vsel %vm22_vm1, %v1306_v14, 0.0 }
 0x550   :  { %294 = vadd.xlane.f32.xlu1 %v293_v15 }
 0x5db   :  { %v292_v16 = vpop.xlane.xlu0 %291 }
 0x5dc   :  { %1307 = vrcp.f32 %v292_v16 }
 0x5dd   :  { %v295_v17 = vpop.xlane.xlu1 %294 }
 0x5de   :  { %1309 = vrcp.f32 %v295_v17 }
 0x5e6   :  { %v1308_v18 = vpop.eup %1307 }
 0x5e7   :  { %v298_v19 = vmul.f32 %v1308_v18, %v1304_v12 }
 0x5e8   :  { %v1310_v21 = vpop.eup %1309 }
 0x5e9   :  { %1062 = vst.msk [vmem:[%s1648_s4 + $0x10] sm:$0xff] %vm22_vm1, %v298_v19  ;;  %v299_v22 = vmul.f32 %v1310_v21, %v1306_v14 }
 0x5eb   :  { %1063 = vst.msk [vmem:[%s1648_s4 + $0x18] sm:$0xff] %vm22_vm1, %v299_v22  ;;  %v308_v23 = vpack.c.bf16 %v299_v22, %v298_v19 }
 0x5ed   :  { %1210 = vmatmul.mubr.msk.bf16.vlgmr.msra.gmra.mrb[8].mxu0 %vm22_vm1, %v308_v23 }
 0x5ee   :  { %1222 = vmatpush3.bf16.msra.mxu0 %v1396_v2  ;;  %1223 = vmatprep.mubr.msk.bf16.mxu0 %vm1360_vm2, %v1359_v0 }
 0x5ef   :  { %1235 = vmatprep.subr.bf16.mxu0 %v1359_v0 }
 0x6c0   :  { %v346_v27 = vpop.f32.mrb[8].mxu0 }
 0x6c1   :  { %v353_v28 = vadd.f32 %v1110_v25, %v346_v27  ;;  %v1211_v29 = vpop.f32.mrb[9].mxu0 }
 0x6c2   :  { %v349_v30 = vpop.f32.mrb[10].mxu0 }
 0x6c3   :  { %v354_v31 = vadd.f32 %v1111_v26, %v349_v30  ;;  %v1212_v32 = vpop.f32.mrb[11].mxu0  ;;  %v355_v33 = vmax.f32 %v353_v28, 0.0 }
 0x6c5   :  { %v356_v34 = vmax.f32 %v354_v31, 0.0 }
 0x6c7   :  { %v357_v35 = vpack.c.bf16 %v356_v34, %v355_v33 }
 0x6c9   :  { %1218 = vmatmul.mubr.msk.bf16.vlgmr.msra.gmra.mrb[8].mxu1 %vm110_vm3, %v357_v35 }
 0x6ca   :  { %1228 = vmatpush3.bf16.msra.mxu1 %v1411_v6  ;;  %1231 = vmatprep.mubr.msk.bf16.mxu1 %vm1360_vm2, %v1359_v0 }
 0x6cb   :  { %1229 = vmatprep.subr.bf16.mxu1 %v1359_v0 }
 0x6ce   :  { %1230 = vmatpush3.bf16.msra.mxu1 %v1418_v7 }
 0x6cf   :  { %1241 = vmatprep.subr.bf16.mxu1 %v1359_v0 }
 0x79c   :  { %v395_v36 = vpop.f32.mrb[8].mxu1 }
 0x79d   :  { %v396_v37 = vadd.f32 %v1435_v20, %v395_v36  ;;  %v1219_v38 = vpop.f32.mrb[9].mxu1 }
 0x79e   :  { %v398_v39 = vpop.f32.mrb[10].mxu1 }
 0x79f   :  { %v399_v40 = vadd.f32 %v1435_v20, %v398_v39  ;;  %v1220_v41 = vpop.f32.mrb[11].mxu1  ;;  %v402_v42 = vsel %vm22_vm1, %v396_v37, -inf  ;;  %v1135_v39 = vld [vmem:[%s1646_s0 + $0x20] sm:$0xff]  }
 0x7a0   :  { %403 = vmax.xlane.f32.xlu0 %v402_v42  ;;  %v1119_v41 = vunpack.c.h.bf16 %v1135_v39 }
 0x7a1   :  { %v405_v43 = vsel %vm22_vm1, %v399_v40, -inf }
 0x7a2   :  { %406 = vmax.xlane.f32.xlu1 %v405_v43 }
 0x82d   :  { %v404_v44 = vpop.xlane.xlu0 %403 }
 0x82e   :  { %v408_v45 = vsub.f32 %v396_v37, %v404_v44 }
 0x82f   :  { %v407_v46 = vpop.xlane.xlu1 %406 }
 0x830   :  { %v410_v47 = vmul.f32 1.442695, %v408_v45  ;;  %v409_v48 = vsub.f32 %v399_v40, %v407_v46  ;;  %v1118_v40 = vunpack.c.l.bf16 %v1135_v39 }
 0x832   :  { %1311 = vpow2.f32 %v410_v47  ;;  %v412_v49 = vmul.f32 1.442695, %v409_v48 }
 0x834   :  { %1313 = vpow2.f32 %v412_v49 }
 0x83c   :  { %v1312_v50 = vpop.eup %1311 }
 0x83d   :  { %v414_v51 = vsel %vm22_vm1, %v1312_v50, 0.0 }
 0x83e   :  { %v1314_v52 = vpop.eup %1313  ;;  %415 = vadd.xlane.f32.xlu0 %v414_v51 }
 0x83f   :  { %v417_v53 = vsel %vm22_vm1, %v1314_v52, 0.0 }
 0x840   :  { %418 = vadd.xlane.f32.xlu1 %v417_v53 }
 0x8cb   :  { %v416_v54 = vpop.xlane.xlu0 %415 }
 0x8cc   :  { %1315 = vrcp.f32 %v416_v54 }
 0x8cd   :  { %v419_v55 = vpop.xlane.xlu1 %418 }
 0x8ce   :  { %1317 = vrcp.f32 %v419_v55 }
 0x8d6   :  { %v1316_v56 = vpop.eup %1315 }
 0x8d7   :  { %v422_v57 = vmul.f32 %v1316_v56, %v1312_v50 }
 0x8d8   :  { %v1318_v58 = vpop.eup %1317 }
 0x8d9   :  { %1068 = vst.msk [vmem:[%s1648_s4 + $0x20] sm:$0xff] %vm22_vm1, %v422_v57  ;;  %v423_v59 = vmul.f32 %v1318_v58, %v1314_v52 }
 0x8db   :  { %1069 = vst.msk [vmem:[%s1648_s4 + $0x28] sm:$0xff] %vm22_vm1, %v423_v59  ;;  %v432_v60 = vpack.c.bf16 %v423_v59, %v422_v57 }
 0x8dd   :  { %1224 = vmatmul.mubr.msk.bf16.vlgmr.msra.gmra.mrb[12].mxu0 %vm22_vm1, %v432_v60 }
 0x8de   :  { %1236 = vmatpush3.bf16.msra.mxu0 %v1396_v2  ;;  %1237 = vmatprep.mubr.msk.bf16.mxu0 %vm1360_vm2, %v1359_v0 }
 0x8df   :  { %1249 = vmatprep.subr.bf16.mxu0 %v1359_v0 }
 0x9b0   :  { %v470_v1 = vpop.f32.mrb[12].mxu0 }
 0x9b1   :  { %v477_v3 = vadd.f32 %v1114_v62, %v470_v1  ;;  %v1225_v4 = vpop.f32.mrb[13].mxu0 }
 0x9b2   :  { %v473_v5 = vpop.f32.mrb[14].mxu0 }
 0x9b3   :  { %v478_v8 = vadd.f32 %v1115_v63, %v473_v5  ;;  %v1226_v9 = vpop.f32.mrb[15].mxu0  ;;  %v479_v10 = vmax.f32 %v477_v3, 0.0 }
 0x9b5   :  { %v480_v11 = vmax.f32 %v478_v8, 0.0 }
 0x9b7   :  { %v481_v12 = vpack.c.bf16 %v480_v11, %v479_v10 }
 0x9b9   :  { %1232 = vmatmul.mubr.msk.bf16.vlgmr.msra.gmra.mrb[12].mxu1 %vm110_vm3, %v481_v12 }
 0x9ba   :  { %1242 = vmatpush3.bf16.msra.mxu1 %v1411_v6  ;;  %1245 = vmatprep.mubr.msk.bf16.mxu1 %vm1360_vm2, %v1359_v0 }
 0x9bb   :  { %1243 = vmatprep.subr.bf16.mxu1 %v1359_v0 }
 0x9be   :  { %1244 = vmatpush3.bf16.msra.mxu1 %v1418_v7 }
 0x9bf   :  { %1255 = vmatprep.subr.bf16.mxu1 %v1359_v0 }
 0xa8c   :  { %v519_v13 = vpop.f32.mrb[12].mxu1 }
 0xa8d   :  { %v520_v14 = vadd.f32 %v1435_v20, %v519_v13  ;;  %v1233_v15 = vpop.f32.mrb[13].mxu1 }
 0xa8e   :  { %v522_v16 = vpop.f32.mrb[14].mxu1 }
 0xa8f   :  { %v523_v17 = vadd.f32 %v1435_v20, %v522_v16  ;;  %v1234_v18 = vpop.f32.mrb[15].mxu1  ;;  %v526_v19 = vsel %vm22_vm1, %v520_v14, -inf  ;;  %v1136_v16 = vld [vmem:[%s1646_s0 + $0x28] sm:$0xff]  }
 0xa90   :  { %527 = vmax.xlane.f32.xlu0 %v526_v19  ;;  %v1123_v18 = vunpack.c.h.bf16 %v1136_v16 }
 0xa91   :  { %v529_v21 = vsel %vm22_vm1, %v523_v17, -inf }
 0xa92   :  { %530 = vmax.xlane.f32.xlu1 %v529_v21 }
 0xb1d   :  { %v528_v22 = vpop.xlane.xlu0 %527 }
 0xb1e   :  { %v532_v23 = vsub.f32 %v520_v14, %v528_v22 }
 0xb1f   :  { %v531_v24 = vpop.xlane.xlu1 %530 }
 0xb20   :  { %v534_v25 = vmul.f32 1.442695, %v532_v23  ;;  %v533_v26 = vsub.f32 %v523_v17, %v531_v24  ;;  %v1122_v17 = vunpack.c.l.bf16 %v1136_v16 }
 0xb22   :  { %1319 = vpow2.f32 %v534_v25  ;;  %v536_v27 = vmul.f32 1.442695, %v533_v26 }
 0xb24   :  { %1321 = vpow2.f32 %v536_v27 }
 0xb2c   :  { %v1320_v28 = vpop.eup %1319 }
 0xb2d   :  { %v538_v29 = vsel %vm22_vm1, %v1320_v28, 0.0 }
 0xb2e   :  { %v1322_v30 = vpop.eup %1321  ;;  %539 = vadd.xlane.f32.xlu0 %v538_v29 }
 0xb2f   :  { %v541_v31 = vsel %vm22_vm1, %v1322_v30, 0.0 }
 0xb30   :  { %542 = vadd.xlane.f32.xlu1 %v541_v31 }
 0xbbb   :  { %v540_v32 = vpop.xlane.xlu0 %539 }
 0xbbc   :  { %1323 = vrcp.f32 %v540_v32 }
 0xbbd   :  { %v543_v33 = vpop.xlane.xlu1 %542 }
 0xbbe   :  { %1325 = vrcp.f32 %v543_v33 }
 0xbc6   :  { %v1324_v34 = vpop.eup %1323 }
 0xbc7   :  { %v546_v35 = vmul.f32 %v1324_v34, %v1320_v28 }
 0xbc8   :  { %v1326_v36 = vpop.eup %1325 }
 0xbc9   :  { %1074 = vst.msk [vmem:[%s1648_s4 + $0x30] sm:$0xff] %vm22_vm1, %v546_v35  ;;  %v547_v37 = vmul.f32 %v1326_v36, %v1322_v30 }
 0xbcb   :  { %1075 = vst.msk [vmem:[%s1648_s4 + $0x38] sm:$0xff] %vm22_vm1, %v547_v37  ;;  %v556_v38 = vpack.c.bf16 %v547_v37, %v546_v35 }
 0xbcd   :  { %1238 = vmatmul.mubr.msk.bf16.vlgmr.msra.gmra.mrb[16].mxu0 %vm22_vm1, %v556_v38 }
 0xbce   :  { %1250 = vmatpush3.bf16.msra.mxu0 %v1396_v2  ;;  %1251 = vmatprep.mubr.msk.bf16.mxu0 %vm1360_vm2, %v1359_v0 }
 0xbcf   :  { %1263 = vmatprep.subr.bf16.mxu0 %v1359_v0 }
 0xca0   :  { %v594_v42 = vpop.f32.mrb[16].mxu0 }
 0xca1   :  { %v601_v43 = vadd.f32 %v1118_v40, %v594_v42  ;;  %v1239_v44 = vpop.f32.mrb[17].mxu0 }
 0xca2   :  { %v597_v45 = vpop.f32.mrb[18].mxu0 }
 0xca3   :  { %v602_v46 = vadd.f32 %v1119_v41, %v597_v45  ;;  %v1240_v47 = vpop.f32.mrb[19].mxu0  ;;  %v603_v48 = vmax.f32 %v601_v43, 0.0 }
 0xca5   :  { %v604_v49 = vmax.f32 %v602_v46, 0.0 }
 0xca7   :  { %v605_v50 = vpack.c.bf16 %v604_v49, %v603_v48 }
 0xca9   :  { %1246 = vmatmul.mubr.msk.bf16.vlgmr.msra.gmra.mrb[16].mxu1 %vm110_vm3, %v605_v50 }
 0xcaa   :  { %1256 = vmatpush3.bf16.msra.mxu1 %v1411_v6  ;;  %1259 = vmatprep.mubr.msk.bf16.mxu1 %vm1360_vm2, %v1359_v0 }
 0xcab   :  { %1257 = vmatprep.subr.bf16.mxu1 %v1359_v0 }
 0xcae   :  { %1258 = vmatpush3.bf16.msra.mxu1 %v1418_v7 }
 0xcaf   :  { %1269 = vmatprep.subr.bf16.mxu1 %v1359_v0 }
 0xd7c   :  { %v643_v51 = vpop.f32.mrb[16].mxu1 }
 0xd7d   :  { %v644_v52 = vadd.f32 %v1435_v20, %v643_v51  ;;  %v1247_v53 = vpop.f32.mrb[17].mxu1 }
 0xd7e   :  { %v646_v54 = vpop.f32.mrb[18].mxu1 }
 0xd7f   :  { %v647_v55 = vadd.f32 %v1435_v20, %v646_v54  ;;  %v1248_v56 = vpop.f32.mrb[19].mxu1  ;;  %v650_v57 = vsel %vm22_vm1, %v644_v52, -inf  ;;  %v1137_v54 = vld [vmem:[%s1646_s0 + $0x30] sm:$0xff]  }
 0xd80   :  { %651 = vmax.xlane.f32.xlu0 %v650_v57  ;;  %v1127_v56 = vunpack.c.h.bf16 %v1137_v54 }
 0xd81   :  { %v653_v58 = vsel %vm22_vm1, %v647_v55, -inf }
 0xd82   :  { %654 = vmax.xlane.f32.xlu1 %v653_v58 }
 0xe0d   :  { %v652_v59 = vpop.xlane.xlu0 %651 }
 0xe0e   :  { %v656_v60 = vsub.f32 %v644_v52, %v652_v59 }
 0xe0f   :  { %v655_v61 = vpop.xlane.xlu1 %654 }
 0xe10   :  { %v658_v62 = vmul.f32 1.442695, %v656_v60  ;;  %v657_v63 = vsub.f32 %v647_v55, %v655_v61  ;;  %v1126_v55 = vunpack.c.l.bf16 %v1137_v54 }
 0xe12   :  { %1327 = vpow2.f32 %v658_v62  ;;  %v660_v1 = vmul.f32 1.442695, %v657_v63 }
 0xe14   :  { %1329 = vpow2.f32 %v660_v1 }
 0xe1c   :  { %v1328_v3 = vpop.eup %1327 }
 0xe1d   :  { %v662_v4 = vsel %vm22_vm1, %v1328_v3, 0.0 }
 0xe1e   :  { %v1330_v5 = vpop.eup %1329  ;;  %663 = vadd.xlane.f32.xlu0 %v662_v4 }
 0xe1f   :  { %v665_v8 = vsel %vm22_vm1, %v1330_v5, 0.0 }
 0xe20   :  { %666 = vadd.xlane.f32.xlu1 %v665_v8 }
 0xeab   :  { %v664_v9 = vpop.xlane.xlu0 %663 }
 0xeac   :  { %1331 = vrcp.f32 %v664_v9 }
 0xead   :  { %v667_v10 = vpop.xlane.xlu1 %666 }
 0xeae   :  { %1333 = vrcp.f32 %v667_v10 }
 0xeb6   :  { %v1332_v11 = vpop.eup %1331 }
 0xeb7   :  { %v670_v12 = vmul.f32 %v1332_v11, %v1328_v3 }
 0xeb8   :  { %v1334_v13 = vpop.eup %1333 }
 0xeb9   :  { %1080 = vst.msk [vmem:[%s1648_s4 + $0x40] sm:$0xff] %vm22_vm1, %v670_v12  ;;  %v671_v14 = vmul.f32 %v1334_v13, %v1330_v5 }
 0xebb   :  { %1081 = vst.msk [vmem:[%s1648_s4 + $0x48] sm:$0xff] %vm22_vm1, %v671_v14  ;;  %v680_v15 = vpack.c.bf16 %v671_v14, %v670_v12 }
 0xebd   :  { %1252 = vmatmul.mubr.msk.bf16.vlgmr.msra.gmra.mrb[20].mxu0 %vm22_vm1, %v680_v15 }
 0xebe   :  { %1264 = vmatpush3.bf16.msra.mxu0 %v1396_v2  ;;  %1265 = vmatprep.mubr.msk.bf16.mxu0 %vm1360_vm2, %v1359_v0 }
 0xebf   :  { %1277 = vmatprep.subr.bf16.mxu0 %v1359_v0 }
 0xf90   :  { %v718_v19 = vpop.f32.mrb[20].mxu0 }
 0xf91   :  { %v725_v21 = vadd.f32 %v1122_v17, %v718_v19  ;;  %v1253_v22 = vpop.f32.mrb[21].mxu0 }
 0xf92   :  { %v721_v23 = vpop.f32.mrb[22].mxu0 }
 0xf93   :  { %v726_v24 = vadd.f32 %v1123_v18, %v721_v23  ;;  %v1254_v25 = vpop.f32.mrb[23].mxu0  ;;  %v727_v26 = vmax.f32 %v725_v21, 0.0 }
 0xf95   :  { %v728_v27 = vmax.f32 %v726_v24, 0.0 }
 0xf97   :  { %v729_v28 = vpack.c.bf16 %v728_v27, %v727_v26 }
 0xf99   :  { %1260 = vmatmul.mubr.msk.bf16.vlgmr.msra.gmra.mrb[20].mxu1 %vm110_vm3, %v729_v28  ;;  %v1138_v28 = vld [vmem:[%s1646_s0 + $0x38] sm:$0xff]  }
 0xf9a   :  { %1270 = vmatpush3.bf16.msra.mxu1 %v1411_v6  ;;  %1273 = vmatprep.mubr.msk.bf16.mxu1 %vm1360_vm2, %v1359_v0 }
 0xf9b   :  { %1271 = vmatprep.subr.bf16.mxu1 %v1359_v0 }
 0xf9e   :  { %1272 = vmatpush3.bf16.msra.mxu1 %v1418_v7 }
 0xf9f   :  { %1283 = vmatprep.subr.bf16.mxu1 %v1359_v0 }
0x106c   :  { %v767_v29 = vpop.f32.mrb[20].mxu1 }
0x106d   :  { %v768_v30 = vadd.f32 %v1435_v20, %v767_v29  ;;  %v1261_v31 = vpop.f32.mrb[21].mxu1  ;;  %v1130_v29 = vunpack.c.l.bf16 %v1138_v28 }
0x106e   :  { %v770_v32 = vpop.f32.mrb[22].mxu1 }
0x106f   :  { %v771_v33 = vadd.f32 %v1435_v20, %v770_v32  ;;  %v1262_v34 = vpop.f32.mrb[23].mxu1  ;;  %v774_v35 = vsel %vm22_vm1, %v768_v30, -inf }
0x1070   :  { %775 = vmax.xlane.f32.xlu0 %v774_v35 }
0x1071   :  { %v777_v36 = vsel %vm22_vm1, %v771_v33, -inf }
0x1072   :  { %778 = vmax.xlane.f32.xlu1 %v777_v36 }
0x10fd   :  { %v776_v37 = vpop.xlane.xlu0 %775 }
0x10fe   :  { %v780_v38 = vsub.f32 %v768_v30, %v776_v37  ;;  %v1131_v30 = vunpack.c.h.bf16 %v1138_v28 }
0x10ff   :  { %v779_v39 = vpop.xlane.xlu1 %778 }
0x1100   :  { %v782_v40 = vmul.f32 1.442695, %v780_v38  ;;  %v781_v41 = vsub.f32 %v771_v33, %v779_v39 }
0x1102   :  { %1335 = vpow2.f32 %v782_v40  ;;  %v784_v42 = vmul.f32 1.442695, %v781_v41 }
0x1104   :  { %1337 = vpow2.f32 %v784_v42 }
0x110c   :  { %v1336_v43 = vpop.eup %1335 }
0x110d   :  { %v786_v44 = vsel %vm22_vm1, %v1336_v43, 0.0 }
0x110e   :  { %v1338_v45 = vpop.eup %1337  ;;  %787 = vadd.xlane.f32.xlu0 %v786_v44 }
0x110f   :  { %v789_v46 = vsel %vm22_vm1, %v1338_v45, 0.0 }
0x1110   :  { %790 = vadd.xlane.f32.xlu1 %v789_v46 }
0x119b   :  { %v788_v47 = vpop.xlane.xlu0 %787 }
0x119c   :  { %1339 = vrcp.f32 %v788_v47 }
0x119d   :  { %v791_v48 = vpop.xlane.xlu1 %790 }
0x119e   :  { %1341 = vrcp.f32 %v791_v48 }
0x11a6   :  { %v1340_v49 = vpop.eup %1339 }
0x11a7   :  { %v794_v50 = vmul.f32 %v1340_v49, %v1336_v43 }
0x11a8   :  { %v1342_v51 = vpop.eup %1341 }
0x11a9   :  { %1086 = vst.msk [vmem:[%s1648_s4 + $0x50] sm:$0xff] %vm22_vm1, %v794_v50  ;;  %v795_v52 = vmul.f32 %v1342_v51, %v1338_v45 }
0x11ab   :  { %1087 = vst.msk [vmem:[%s1648_s4 + $0x58] sm:$0xff] %vm22_vm1, %v795_v52  ;;  %v804_v53 = vpack.c.bf16 %v795_v52, %v794_v50 }
0x11ad   :  { %1266 = vmatmul.mubr.msk.bf16.vlgmr.msra.gmra.mrb[24].mxu0 %vm22_vm1, %v804_v53 }
0x11ae   :  { %1278 = vmatpush3.bf16.msra.mxu0 %v1396_v2  ;;  %1279 = vmatprep.mubr.msk.bf16.mxu0 %vm1360_vm2, %v1359_v0 }
0x1280   :  { %v842_v57 = vpop.f32.mrb[24].mxu0 }
0x1281   :  { %v849_v58 = vadd.f32 %v1126_v55, %v842_v57  ;;  %v1267_v59 = vpop.f32.mrb[25].mxu0 }
0x1282   :  { %v845_v60 = vpop.f32.mrb[26].mxu0 }
0x1283   :  { %v850_v61 = vadd.f32 %v1127_v56, %v845_v60  ;;  %v1268_v62 = vpop.f32.mrb[27].mxu0  ;;  %v851_v63 = vmax.f32 %v849_v58, 0.0 }
0x1285   :  { %v852_v1 = vmax.f32 %v850_v61, 0.0 }
0x1287   :  { %v853_v3 = vpack.c.bf16 %v852_v1, %v851_v63 }
0x1289   :  { %1274 = vmatmul.mubr.msk.bf16.vlgmr.msra.gmra.mrb[24].mxu1 %vm110_vm3, %v853_v3 }
0x128a   :  { %1284 = vmatpush3.bf16.msra.mxu1 %v1411_v6  ;;  %1287 = vmatprep.mubr.msk.bf16.mxu1 %vm1360_vm2, %v1359_v0 }
0x128b   :  { %1285 = vmatprep.subr.bf16.mxu1 %v1359_v0 }
0x128e   :  { %1286 = vmatpush3.bf16.msra.mxu1 %v1418_v7 }
0x135c   :  { %v891_v2 = vpop.f32.mrb[24].mxu1 }
0x135d   :  { %v892_v4 = vadd.f32 %v1435_v20, %v891_v2  ;;  %v1275_v5 = vpop.f32.mrb[25].mxu1 }
0x135e   :  { %v894_v8 = vpop.f32.mrb[26].mxu1 }
0x135f   :  { %v895_v9 = vadd.f32 %v1435_v20, %v894_v8  ;;  %v1276_v10 = vpop.f32.mrb[27].mxu1  ;;  %v898_v11 = vsel %vm22_vm1, %v892_v4, -inf }
0x1360   :  { %899 = vmax.xlane.f32.xlu0 %v898_v11 }
0x1361   :  { %v901_v6 = vsel %vm22_vm1, %v895_v9, -inf }
0x1362   :  { %902 = vmax.xlane.f32.xlu1 %v901_v6 }
0x13ed   :  { %v900_v12 = vpop.xlane.xlu0 %899 }
0x13ee   :  { %v904_v13 = vsub.f32 %v892_v4, %v900_v12 }
0x13ef   :  { %v903_v14 = vpop.xlane.xlu1 %902 }
0x13f0   :  { %v906_v0 = vmul.f32 1.442695, %v904_v13  ;;  %v905_v15 = vsub.f32 %v895_v9, %v903_v14 }
0x13f2   :  { %1343 = vpow2.f32 %v906_v0  ;;  %v908_v7 = vmul.f32 1.442695, %v905_v15 }
0x13f4   :  { %1345 = vpow2.f32 %v908_v7 }
0x13fc   :  { %v1344_v16 = vpop.eup %1343 }
0x13fd   :  { %v910_v17 = vsel %vm22_vm1, %v1344_v16, 0.0 }
0x13fe   :  { %v1346_v18 = vpop.eup %1345  ;;  %911 = vadd.xlane.f32.xlu0 %v910_v17 }
0x13ff   :  { %v913_v19 = vsel %vm22_vm1, %v1346_v18, 0.0 }
0x1400   :  { %914 = vadd.xlane.f32.xlu1 %v913_v19 }
0x148b   :  { %v912_v21 = vpop.xlane.xlu0 %911 }
0x148c   :  { %1347 = vrcp.f32 %v912_v21 }
0x148d   :  { %v915_v22 = vpop.xlane.xlu1 %914 }
0x148e   :  { %1349 = vrcp.f32 %v915_v22 }
0x1496   :  { %v1348_v23 = vpop.eup %1347 }
0x1497   :  { %v918_v24 = vmul.f32 %v1348_v23, %v1344_v16 }
0x1498   :  { %v1350_v25 = vpop.eup %1349 }
0x1499   :  { %1092 = vst.msk [vmem:[%s1648_s4 + $0x60] sm:$0xff] %vm22_vm1, %v918_v24  ;;  %v919_v26 = vmul.f32 %v1350_v25, %v1346_v18 }
0x149b   :  { %1093 = vst.msk [vmem:[%s1648_s4 + $0x68] sm:$0xff] %vm22_vm1, %v919_v26  ;;  %v928_v27 = vpack.c.bf16 %v919_v26, %v918_v24 }
0x149d   :  { %1280 = vmatmul.mubr.msk.bf16.vlgmr.msra.gmra.mrb[28].mxu0 %vm22_vm1, %v928_v27 }
0x1570   :  { %v966_v31 = vpop.f32.mrb[28].mxu0 }
0x1571   :  { %v973_v32 = vadd.f32 %v1130_v29, %v966_v31  ;;  %v1281_v33 = vpop.f32.mrb[29].mxu0 }
0x1572   :  { %v969_v34 = vpop.f32.mrb[30].mxu0 }
0x1573   :  { %v974_v35 = vadd.f32 %v1131_v30, %v969_v34  ;;  %v1282_v36 = vpop.f32.mrb[31].mxu0  ;;  %v975_v37 = vmax.f32 %v973_v32, 0.0 }
0x1575   :  { %v976_v38 = vmax.f32 %v974_v35, 0.0 }
0x1577   :  { %v977_v39 = vpack.c.bf16 %v976_v38, %v975_v37 }
0x1579   :  { %1288 = vmatmul.mubr.msk.bf16.vlgmr.msra.gmra.mrb[28].mxu1 %vm110_vm3, %v977_v39 }
0x164c   :  { %v1015_v40 = vpop.f32.mrb[28].mxu1 }
0x164d   :  { %v1016_v41 = vadd.f32 %v1435_v20, %v1015_v40  ;;  %v1289_v42 = vpop.f32.mrb[29].mxu1 }
0x164e   :  { %v1018_v43 = vpop.f32.mrb[30].mxu1 }
0x164f   :  { %v1019_v44 = vadd.f32 %v1435_v20, %v1018_v43  ;;  %v1290_v45 = vpop.f32.mrb[31].mxu1  ;;  %v1022_v46 = vsel %vm22_vm1, %v1016_v41, -inf }
0x1650   :  { %1023 = vmax.xlane.f32.xlu0 %v1022_v46 }
0x1651   :  { %v1025_v47 = vsel %vm22_vm1, %v1019_v44, -inf }
0x1652   :  { %1026 = vmax.xlane.f32.xlu1 %v1025_v47 }
0x16dd   :  { %v1024_v48 = vpop.xlane.xlu0 %1023 }
0x16de   :  { %v1028_v49 = vsub.f32 %v1016_v41, %v1024_v48 }
0x16df   :  { %v1027_v50 = vpop.xlane.xlu1 %1026 }
0x16e0   :  { %v1030_v51 = vmul.f32 1.442695, %v1028_v49  ;;  %v1029_v52 = vsub.f32 %v1019_v44, %v1027_v50 }
0x16e2   :  { %1351 = vpow2.f32 %v1030_v51  ;;  %v1032_v53 = vmul.f32 1.442695, %v1029_v52 }
0x16e4   :  { %1353 = vpow2.f32 %v1032_v53 }
0x16ec   :  { %v1352_v54 = vpop.eup %1351 }
0x16ed   :  { %v1034_v55 = vsel %vm22_vm1, %v1352_v54, 0.0 }
0x16ee   :  { %v1354_v56 = vpop.eup %1353  ;;  %1035 = vadd.xlane.f32.xlu0 %v1034_v55 }
0x16ef   :  { %v1037_v20 = vsel %vm22_vm1, %v1354_v56, 0.0 }
0x16f0   :  { %1038 = vadd.xlane.f32.xlu1 %v1037_v20 }
0x177b   :  { %v1036_v57 = vpop.xlane.xlu0 %1035 }
0x177c   :  { %1355 = vrcp.f32 %v1036_v57 }
0x177d   :  { %v1039_v58 = vpop.xlane.xlu1 %1038 }
0x177e   :  { %1357 = vrcp.f32 %v1039_v58 }
0x1786   :  { %v1356_v59 = vpop.eup %1355 }
0x1787   :  { %v1042_v60 = vmul.f32 %v1356_v59, %v1352_v54 }
0x1788   :  { %v1358_v61 = vpop.eup %1357 }
0x1789   :  { %1098 = vst.msk [vmem:[%s1648_s4 + $0x70] sm:$0xff] %vm22_vm1, %v1042_v60  ;;  %1047 = vst.msk [vmem:[#allocation2] sm:$0xff] %vm22_vm1, %v1042_v60  ;;  %v1043_v62 = vmul.f32 %v1358_v61, %v1354_v56 }
0x178b   :  { %1099 = vst.msk [vmem:[%s1648_s4 + $0x78] sm:$0xff] %vm22_vm1, %v1043_v62  ;;  %1048 = vst.msk [vmem:[#allocation2 + $0x8] sm:$0xff] %vm22_vm1, %v1043_v62 }

</bundles_post_ra>
